<compile_context>
chip_gen: v5e
topology: v5e:2x2
jax: 0.10.0
libtpu: 0.0.40
codegen_flags: <defaults>
</compile_context>

<pallas_src>
import functools

import jax
import jax.numpy as jnp
from jax.experimental import pallas as pl
from jax.experimental.pallas import tpu as pltpu


def _rmsnorm_kernel(x_ref, w_ref, o_ref, *, eps, inv_h):
    # x_ref: [T, H] block, w_ref: [1, H], o_ref: [T, H]
    x = x_ref[...].astype(jnp.float32)                       # upcast, matches PyTorch
    var = jnp.sum(x * x, axis=-1, keepdims=True) * inv_h     # [T, 1] mean of squares
    inv = jax.lax.rsqrt(var + eps)                           # EUP rsqrt (free slot)
    y = (x * inv).astype(o_ref.dtype)                        # cast back to input dtype
    o_ref[...] = (w_ref[...] * y).astype(o_ref.dtype)        # scale by weight, single store


def _pick_row_tile(n_rows, hidden, in_itemsize, out_itemsize,
                   max_rows=1024, vmem_budget=16 * 1024 * 1024):
    """Largest row tile (multiple of 8) whose buffers fit a VMEM budget."""
    if n_rows <= 8:
        return max(n_rows, 1)          # single block == full array, always legal
    # Double-buffered input + output, plus f32 intermediates (x_f32, x*inv).
    per_row = hidden * (2 * in_itemsize + 2 * out_itemsize + 8)
    rows = vmem_budget // max(per_row, 1)
    rows = max(8, min(max_rows, (rows // 8) * 8))
    # No point exceeding the (8-padded) row count.
    return min(rows, ((n_rows + 7) // 8) * 8)


def llama_rmsnorm(x, weight, eps=1e-6):
    """RMSNorm over the last axis of `x` with learnable `weight` ([H])."""
    orig_shape = x.shape
    orig_dtype = x.dtype
    H = orig_shape[-1]

    x2 = x.reshape(-1, H)
    N = x2.shape[0]

    tile = _pick_row_tile(N, H, x2.dtype.itemsize, jnp.dtype(orig_dtype).itemsize)
    n_blocks = pl.cdiv(N, tile)
    Np = n_blocks * tile
    if Np != N:
        # Zero rows normalize to finite values and are sliced off afterwards;
        # padding keeps every block full (no partial blocks / OOB traffic).
        x2 = jnp.pad(x2, ((0, Np - N), (0, 0)))

    w2 = weight.reshape(1, H)

    out = pl.pallas_call(
        functools.partial(_rmsnorm_kernel, eps=float(eps), inv_h=1.0 / float(H)),
        out_shape=jax.ShapeDtypeStruct((Np, H), orig_dtype),
        grid_spec=pltpu.PrefetchScalarGridSpec(
            num_scalar_prefetch=0,
            grid=(n_blocks,),
            in_specs=[
                pl.BlockSpec((tile, H), lambda i: (i, 0)),   # x row block
                pl.BlockSpec((1, H), lambda i: (0, 0)),      # weight (VMEM-resident)
            ],
            out_specs=pl.BlockSpec((tile, H), lambda i: (i, 0)),
        ),
        compiler_params=pltpu.CompilerParams(
            dimension_semantics=("parallel",),               # independent row blocks
        ),
    )(x2, w2)

    if Np != N:
        out = out[:N]
    return out.reshape(orig_shape)


def _reference(x, weight, eps):
    """Pure-JAX replica of the PyTorch forward."""
    xf = x.astype(jnp.float32)
    var = jnp.mean(xf * xf, axis=-1, keepdims=True)
    y = (xf * jax.lax.rsqrt(var + eps)).astype(x.dtype)
    return (weight * y).astype(x.dtype)


if __name__ == "__main__":
    # Small shapes consistent with the module: batch=2, seq=8, hidden=256
    # (hidden a multiple of 128 so the output store is lane-dense).
    B, S, H = 2, 8, 256
    eps = 1e-6

    key = jax.random.PRNGKey(0)
    k_x, k_w, k_xb = jax.random.split(key, 3)

    # float32 check
    x = jax.random.normal(k_x, (B, S, H), jnp.float32)
    weight = 1.0 + 0.1 * jax.random.normal(k_w, (H,), jnp.float32)

    y = jax.block_until_ready(llama_rmsnorm(x, weight, eps=eps))
    y_ref = _reference(x, weight, eps)
    assert y.shape == x.shape and y.dtype == x.dtype
    assert jnp.allclose(y, y_ref, atol=1e-5, rtol=1e-5), "f32 mismatch vs reference"

    # bfloat16 check (internal math still in f32, matching the PyTorch upcast)
    xb = jax.random.normal(k_xb, (B, S, H), jnp.float32).astype(jnp.bfloat16)
    wb = weight.astype(jnp.bfloat16)
    yb = jax.block_until_ready(llama_rmsnorm(xb, wb, eps=eps))
    yb_ref = _reference(xb, wb, eps)
    assert yb.dtype == jnp.bfloat16
    assert jnp.allclose(yb.astype(jnp.float32), yb_ref.astype(jnp.float32),
                        atol=2e-2, rtol=2e-2), "bf16 mismatch vs reference"

    print("KERNEL_OK")
</pallas_src>

<mosaic_0001>
module attributes {stable_mosaic.version = 11 : i64} {
  func.func @_rmsnorm_kernel(%arg0: i32, %arg1: memref<16x256xf32, #tpu.memory_space<vmem>>, %arg2: memref<1x256xf32, #tpu.memory_space<vmem>>, %arg3: memref<16x256xf32, #tpu.memory_space<vmem>>) attributes {dimension_semantics = [#tpu.dimension_semantics<parallel>], iteration_bounds = array<i64: 1>, scalar_prefetch = 0 : i64, scratch_operands = 0 : i64, tpu.core_type = #tpu.core_type<tc>, window_params = [{transform_indices = @transform_0, window_bounds = array<i64: 16, 256>}, {pipeline_mode = #tpu.pipeline_mode<synchronous>, transform_indices = @transform_1, window_bounds = array<i64: 1, 256>}, {transform_indices = @transform_2, window_bounds = array<i64: 16, 256>}]} {
    %c0 = arith.constant 0 : index
    %c0_0 = arith.constant 0 : index
    %0 = vector.load %arg1[%c0, %c0_0] : memref<16x256xf32, #tpu.memory_space<vmem>>, vector<16x256xf32>
    %1 = arith.mulf %0, %0 : vector<16x256xf32>
    %cst = arith.constant dense<0.000000e+00> : vector<16xf32>
    %2 = vector.multi_reduction <add>, %1, %cst [1] : vector<16x256xf32> to vector<16xf32>
    %3 = vector.shape_cast %2 : vector<16xf32> to vector<16x1xf32>
    %cst_1 = arith.constant 3.906250e-03 : f32
    %4 = vector.broadcast %cst_1 : f32 to vector<16x1xf32>
    %5 = arith.mulf %3, %4 : vector<16x1xf32>
    %cst_2 = arith.constant 9.99999997E-7 : f32
    %6 = vector.broadcast %cst_2 : f32 to vector<16x1xf32>
    %7 = arith.addf %5, %6 : vector<16x1xf32>
    %8 = math.rsqrt %7 : vector<16x1xf32>
    %9 = vector.broadcast %8 : vector<16x1xf32> to vector<16x256xf32>
    %10 = arith.mulf %0, %9 : vector<16x256xf32>
    %c0_3 = arith.constant 0 : index
    %c0_4 = arith.constant 0 : index
    %11 = vector.load %arg2[%c0_3, %c0_4] : memref<1x256xf32, #tpu.memory_space<vmem>>, vector<1x256xf32>
    %12 = vector.broadcast %11 : vector<1x256xf32> to vector<16x256xf32>
    %13 = arith.mulf %12, %10 : vector<16x256xf32>
    %c0_5 = arith.constant 0 : index
    %c0_6 = arith.constant 0 : index
    %14 = vector.load %arg3[%c0_5, %c0_6] : memref<16x256xf32, #tpu.memory_space<vmem>>, vector<16x256xf32>
    tpu.vector_store %arg3[%c0_5, %c0_6], %13 {strides = array<i32>} : memref<16x256xf32, #tpu.memory_space<vmem>>, vector<16x256xf32>,
    return
  }
  func.func @transform_0(%arg0: i32) -> (i32, i32) {
    %c0_i32 = arith.constant 0 : i32
    %c0_i32_0 = arith.constant 0 : i32
    return %arg0, %c0_i32 : i32, i32
  }
  func.func @transform_1(%arg0: i32) -> (i32, i32) {
    %c0_i32 = arith.constant 0 : i32
    %c0_i32_0 = arith.constant 0 : i32
    %c0_i32_1 = arith.constant 0 : i32
    return %c0_i32, %c0_i32_0 : i32, i32
  }
  func.func @transform_2(%arg0: i32) -> (i32, i32) {
    %c0_i32 = arith.constant 0 : i32
    %c0_i32_0 = arith.constant 0 : i32
    return %arg0, %c0_i32 : i32, i32
  }
}

</mosaic_0001>

<bundles_post_ra>
// kernel: tpu_custom_call.1
= control target key start
LH: loop header
LB: loop body
LE: loop exit
PB: predicated region body
PF: predicated region fallthrough
CT: control target
= control target key end

     0   :  { %7 = vsyncpa [#allocation3], 0  ;;  %s240_s0 = inlined_call_operand.hbm [shape: f32[16,256], index: 0, kind: input, shape index: {}]   ;;  %s241_s1 = inlined_call_operand.hbm [shape: f32[1,256], index: 1, kind: input, shape index: {}]   ;;  %s242_s2 = inlined_call_operand.hbm [shape: f32[16,256], index: 2, kind: output, shape index: {}]  }
   0x1   :  { %8 = vsyncpa [#allocation6], 0 }
   0x2   :  { %9 = vsyncpa [#allocation4], 0  ;;  %s14_s11 = sshll.u32 %s240_s0, 4  ;;  %s205_s12 = smov [#allocation2]   ;;  %s15_s11 = int_to_ptr.hbm [resolvable:$true] %s14_s11 }
   0x3   :  { %s16_s13 = sshll.u32 %s205_s12, 4  ;;  %s28_s16 = sshll.u32 %s241_s1, 4  ;;  %s17_s13 = int_to_ptr.vmem [resolvable:$true] %s16_s13  ;;  %s29_s16 = int_to_ptr.hbm [resolvable:$true] %s28_s16 }
   0x4   :  { %s206_s17 = smov 256   ;;  %s207_s18 = smov 16  }
   0x5   :  { %22 = dma.hbm_to_vmem [thread:$0]  %s15_s11, 512, %s17_s13, [#allocation3], %s206_s17, %s206_s17, %s207_s18  }
   0x6   :  { %s208_s19 = smov [#allocation5]  }
   0x7   :  { %s30_s20 = sshll.u32 %s208_s19, 4  ;;  %s31_s20 = int_to_ptr.vmem [resolvable:$true] %s30_s20 }
   0x8   :  { %33 = dma.hbm_to_vmem [thread:$0]  %s29_s16, 32, %s31_s20, [#allocation6]  }
   0x9   :  { %199 = dma.done.wait [#allocation3], 512  }
   0xa   :  { %200 = vsyncadd [#allocation3], 4294966784 }
   0xb   :  { %201 = dma.done.wait [#allocation6], 32  }
   0xc   :  { %202 = vsyncadd [#allocation6], 4294967264  ;;  %v42_v0 = vld [vmem:[#allocation2] sm:$0xff]  ;;  %v43_v1 = vld [vmem:[#allocation2 + $0x8] sm:$0xff]  ;;  %s209_s0 = smov [#allocation7]   ;;  %s104_s23 = sshll.u32 %s242_s2, 4  ;;  %s105_s23 = int_to_ptr.hbm [resolvable:$true] %s104_s23 }
   0xd   :  { %v46_v2 = vmul.f32 %v42_v0, %v42_v0  ;;  %v47_v3 = vmul.f32 %v43_v1, %v43_v1  ;;  %v44_v4 = vld [vmem:[#allocation2 + $0x10] sm:$0xff]  ;;  %v45_v5 = vld [vmem:[#allocation2 + $0x18] sm:$0xff]  ;;  %v84_v20 = vld [vmem:[#allocation5] sm:$0x3]  ;;  %s102_s1 = sshll.u32 %s209_s0, 4  ;;  %s103_s1 = int_to_ptr.vmem [resolvable:$true] %s102_s1 }
   0xe   :  { %v48_v7 = vmul.f32 %v44_v4, %v44_v4  ;;  %v49_v8 = vmul.f32 %v45_v5, %v45_v5  ;;  %v86_v25 = vperm.slane %v84_v20, 0  ;;  %v87_v26 = vperm.slane %v84_v20, 1 }
   0xf   :  { %v50_v6 = vadd.f32 %v47_v3, %v46_v2 }
  0x10   :  { %v53_v9 = vadd.f32 %v49_v8, %v48_v7 }
  0x11   :  { %51 = vadd.xlane.f32.xlu0 %v50_v6 }
  0x19   :  { %54 = vadd.xlane.f32.xlu0 %v53_v9 }
  0x84   :  { %v52_v10 = vpop.xlane.xlu0 %51 }
  0x85   :  { %v56_v11 = vmul.f32 0.00390625, %v52_v10 }
  0x87   :  { %v58_v12 = vadd.f32 1e-06, %v56_v11 }
  0x89   :  { %123 = vrsqrt.f32 %v58_v12  ;;  %vm66_vm1 = vweird.f32 %v58_v12 }
  0x8c   :  { %v55_v13 = vpop.xlane.xlu0 %54 }
  0x8d   :  { %v57_v14 = vmul.f32 0.00390625, %v55_v13 }
  0x8f   :  { %v124_v15 = vpop.eup %123  ;;  %v59_v16 = vadd.f32 1e-06, %v57_v14 }
  0x90   :  { %v61_v17 = vmul.f32 %v124_v15, %v58_v12  ;;  %vm67_vm0 = vweird.f32 %v124_v15 }
  0x91   :  { %125 = vrsqrt.f32 %v59_v16  ;;  %vm68_vm2 = vmor %vm66_vm1, %vm67_vm0  ;;  %vm76_vm4 = vweird.f32 %v59_v16 }
  0x92   :  { %v62_v18 = vmul.f32 %v124_v15, %v61_v17 }
  0x94   :  { %v63_v19 = vmul.f32 0.5, %v62_v18 }
  0x96   :  { %v64_v21 = vsub.f32 1.5, %v63_v19 }
  0x97   :  { %v126_v22 = vpop.eup %125 }
  0x98   :  { %v65_v23 = vmul.f32 %v124_v15, %v64_v21  ;;  %v71_v24 = vmul.f32 %v126_v22, %v59_v16  ;;  %vm77_vm3 = vweird.f32 %v126_v22 }
  0x99   :  { %vm78_vm5 = vmor %vm76_vm4, %vm77_vm3 }
  0x9a   :  { %v69_v27 = vsel %vm68_vm2, %v124_v15, %v65_v23  ;;  %v72_v28 = vmul.f32 %v126_v22, %v71_v24 }
  0x9b   :  { %v80_v29 = vmul.f32 %v69_v27, %v42_v0  ;;  %v81_v30 = vmul.f32 %v69_v27, %v43_v1 }
  0x9c   :  { %v73_v31 = vmul.f32 0.5, %v72_v28 }
  0x9d   :  { %v90_v32 = vmul.f32 %v86_v25, %v80_v29  ;;  %v91_v33 = vmul.f32 %v87_v26, %v81_v30 }
  0x9e   :  { %v74_v34 = vsub.f32 1.5, %v73_v31 }
  0x9f   :  { %94 = vst [vmem:[#allocation7] sm:$0xff] %v90_v32 }
  0xa0   :  { %95 = vst [vmem:[#allocation7 + $0x8] sm:$0xff] %v91_v33  ;;  %v75_v35 = vmul.f32 %v126_v22, %v74_v34 }
  0xa2   :  { %v79_v36 = vsel %vm78_vm5, %v126_v22, %v75_v35 }
  0xa3   :  { %v82_v37 = vmul.f32 %v79_v36, %v44_v4  ;;  %v83_v38 = vmul.f32 %v79_v36, %v45_v5 }
  0xa5   :  { %v92_v39 = vmul.f32 %v86_v25, %v82_v37  ;;  %v93_v40 = vmul.f32 %v87_v26, %v83_v38 }
  0xa7   :  { %96 = vst [vmem:[#allocation7 + $0x10] sm:$0xff] %v92_v39 }
  0xa8   :  { %97 = vst [vmem:[#allocation7 + $0x18] sm:$0xff] %v93_v40 }
  0xa9   :  { %110 = dma.vmem_to_hbm [thread:$0]  %s103_s1, 512, %s105_s23, [#allocation4], %s206_s17, %s206_s17, %s207_s18  }
  0xaa   :  { %203 = dma.done.wait [#allocation4], 512  }
  0xab   :  { %204 = vsyncadd [#allocation4], 4294966784 }
  0xac   :  { %115 = vsyncpa [#allocation3], 1 }
  0xad   :  { %116 = vsyncpa [#allocation6], 1 }
  0xae   :  { %117 = vsyncpa [#allocation4], 1 }

</bundles_post_ra>
